<compile_context>
chip_gen: v5e
topology: v5e:2x2
jax: 0.10.0
libtpu: 0.0.40
codegen_flags: <defaults>
</compile_context>

<pallas_src>
import jax
import jax.numpy as jnp
from jax.experimental import pallas as pl
from jax.experimental.pallas import tpu as pltpu

_LANES = 128            # vreg lane width
_MAX_TILE_ROWS = 4096   # absolute upper clamp on tile rows (generation cap applied too)

# Packed parameter-vector layout (lives in SMEM, read as scalars).
_W_RAD, _B_RAD, _W_LEFT, _B_LEFT, _W_RIGHT, _B_RIGHT, _W_ENC0, _W_ENC1, _B_ENC = range(9)


# ---------------------------------------------------------------------------
# Kernels (channels are separate lane-dense (tile_rows, 128) refs)
# ---------------------------------------------------------------------------
def _kernel_no_left(params_ref, radius_ref, right_ref, out_ref):
    """left_input is None for every node: 2 input channels, no left math."""
    w_rad, b_rad = params_ref[_W_RAD], params_ref[_B_RAD]
    w_r, b_r = params_ref[_W_RIGHT], params_ref[_B_RIGHT]
    w_e0, w_e1, b_e = params_ref[_W_ENC0], params_ref[_W_ENC1], params_ref[_B_ENC]

    radius = radius_ref[...].astype(jnp.float32)
    right = right_ref[...].astype(jnp.float32)

    rad_h = jnp.tanh(radius * w_rad + b_rad)
    ctx = jnp.tanh(right * w_r + b_r)
    out_ref[...] = jnp.tanh(rad_h * w_e0 + ctx * w_e1 + b_e)


def _kernel_all_left(params_ref, radius_ref, left_ref, right_ref, out_ref):
    """Every node has a left child: 3 input channels, no mask channel."""
    w_rad, b_rad = params_ref[_W_RAD], params_ref[_B_RAD]
    w_l, b_l = params_ref[_W_LEFT], params_ref[_B_LEFT]
    w_r, b_r = params_ref[_W_RIGHT], params_ref[_B_RIGHT]
    w_e0, w_e1, b_e = params_ref[_W_ENC0], params_ref[_W_ENC1], params_ref[_B_ENC]

    radius = radius_ref[...].astype(jnp.float32)
    left = left_ref[...].astype(jnp.float32)
    right = right_ref[...].astype(jnp.float32)

    rad_h = jnp.tanh(radius * w_rad + b_rad)
    ctx = jnp.tanh(right * w_r + b_r + left * w_l + b_l)
    out_ref[...] = jnp.tanh(rad_h * w_e0 + ctx * w_e1 + b_e)


def _kernel_masked(params_ref, radius_ref, left_ref, right_ref, mask_ref, out_ref):
    """Per-node has-left mask (int8 channel); left term gated with a select so
    garbage / NaN in the left slot of mask-off nodes cannot leak through."""
    w_rad, b_rad = params_ref[_W_RAD], params_ref[_B_RAD]
    w_l, b_l = params_ref[_W_LEFT], params_ref[_B_LEFT]
    w_r, b_r = params_ref[_W_RIGHT], params_ref[_B_RIGHT]
    w_e0, w_e1, b_e = params_ref[_W_ENC0], params_ref[_W_ENC1], params_ref[_B_ENC]

    radius = radius_ref[...].astype(jnp.float32)
    left = left_ref[...].astype(jnp.float32)
    right = right_ref[...].astype(jnp.float32)
    has_left = mask_ref[...] > 0          # int8 -> bool (VPU compare)

    rad_h = jnp.tanh(radius * w_rad + b_rad)
    ctx = right * w_r + b_r
    ctx = ctx + jnp.where(has_left, left * w_l + b_l, 0.0)
    ctx = jnp.tanh(ctx)
    out_ref[...] = jnp.tanh(rad_h * w_e0 + ctx * w_e1 + b_e)


# ---------------------------------------------------------------------------
# Helpers
# ---------------------------------------------------------------------------
def _round_up(x, m):
    return (x + m - 1) // m * m


def _align_for_dtype(dtype):
    # f32 -> 8 sublanes, bf16 -> 16, int8 -> 32 (native packed tile heights).
    return 32 // jnp.dtype(dtype).itemsize


def _vmem_capacity_bytes():
    try:
        return int(pltpu.get_tpu_info().vmem_capacity_bytes)
    except Exception:
        return 64 << 20  # conservative fallback = v7x per-core VMEM


def _pack_params(params):
    """Pack the 9 scalars into one f32 vector (goes to SMEM)."""
    return jnp.concatenate([
        params["w_rad"].reshape(-1), params["b_rad"].reshape(-1),
        params["w_left"].reshape(-1), params["b_left"].reshape(-1),
        params["w_right"].reshape(-1), params["b_right"].reshape(-1),
        params["w_enc"].reshape(-1),          # -> (w_enc0, w_enc1)
        params["b_enc"].reshape(-1),
    ]).astype(jnp.float32)                    # shape (9,)


def _pack_channel(x, rows, dtype):
    """Pack a per-node scalar vector (N,) lane-dense into a (rows, 128) array."""
    flat = jnp.asarray(x).reshape(-1).astype(dtype)
    flat = jnp.pad(flat, (0, rows * _LANES - flat.shape[0]))
    return flat.reshape(rows, _LANES)


def _pallas_forward(kernel, params_vec, channels, rows, tile_rows, vmem_limit):
    n_tiles = rows // tile_rows
    out_shape = jax.ShapeDtypeStruct((rows, _LANES), jnp.float32)
    smem_spec = pl.BlockSpec(memory_space=pltpu.MemorySpace.SMEM)

    if n_tiles == 1:
        # Tiny batch: single block, gridless call (no software-pipeline prologue).
        return pl.pallas_call(
            kernel,
            in_specs=[smem_spec]
                     + [pl.BlockSpec(memory_space=pltpu.MemorySpace.VMEM)] * len(channels),
            out_specs=pl.BlockSpec(memory_space=pltpu.MemorySpace.VMEM),
            out_shape=out_shape,
            compiler_params=pltpu.CompilerParams(vmem_limit_bytes=vmem_limit),
        )(params_vec, *channels)

    chan_spec = pl.BlockSpec((tile_rows, _LANES), lambda r: (r, 0))
    return pl.pallas_call(
        kernel,
        grid=(n_tiles,),
        in_specs=[smem_spec] + [chan_spec] * len(channels),
        out_specs=pl.BlockSpec((tile_rows, _LANES), lambda r: (r, 0)),
        out_shape=out_shape,
        compiler_params=pltpu.CompilerParams(
            dimension_semantics=("parallel",),     # megacore-shard the node axis (v7x)
            vmem_limit_bytes=vmem_limit),
    )(params_vec, *channels)


# ---------------------------------------------------------------------------
# Public wrappers
# ---------------------------------------------------------------------------
def nonleaf_encoder_batched(params, radius, right, left=None, has_left=None,
                            *, max_tile_rows=None, channel_dtype=jnp.float32):
    """Forward for N tree nodes in one pallas_call.

    radius, right: (N,) / (N,1)
    left:          (N,) / (N,1) or None  (None => no node has a left child)
    has_left:      optional (N,) mask, truthy where a left child exists.
                   If `left` is given and has_left is None, every node is assumed
                   to have a left child (3-channel kernel, no mask traffic).
    channel_dtype: input channel storage dtype (float32 default; bfloat16 halves
                   input HBM bytes -- math is still f32 inside the kernel, but the
                   inputs themselves are rounded to bf16).
    returns:       (N, 1) f32
    """
    radius = jnp.asarray(radius, jnp.float32).reshape(-1)
    right = jnp.asarray(right, jnp.float32).reshape(-1)
    n = radius.shape[0]

    # --- pick kernel + channel list / dtypes --------------------------------
    if left is None:
        kernel = _kernel_no_left
        chan_vals = [radius, right]
        chan_dtypes = [channel_dtype, channel_dtype]
    else:
        left = jnp.asarray(left, jnp.float32).reshape(-1)
        if has_left is None:
            kernel = _kernel_all_left
            chan_vals = [radius, left, right]
            chan_dtypes = [channel_dtype] * 3
        else:
            kernel = _kernel_masked
            mask = (jnp.asarray(has_left).reshape(-1) > 0).astype(jnp.int8)
            chan_vals = [radius, left, right, mask]
            chan_dtypes = [channel_dtype] * 3 + [jnp.int8]

    # --- tiling: bounded padding, generation-aware cap, >=2 tiles for v7x ----
    align = max(_align_for_dtype(dt) for dt in chan_dtypes)
    rows_needed = max(align, _round_up(pl.cdiv(n, _LANES), align))

    per_row_bytes = sum(_LANES * jnp.dtype(dt).itemsize for dt in chan_dtypes) \
        + _LANES * 4                                   # + f32 output row
    vmem_cap = _vmem_capacity_bytes()
    cap = (vmem_cap // 3) // (2 * per_row_bytes)       # double-buffered in+out blocks
    cap = max(align, (cap // align) * align)
    cap = min(cap, _MAX_TILE_ROWS)
    if max_tile_rows is not None:
        cap = min(cap, max(align, _round_up(int(max_tile_rows), align)))

    n_tiles = pl.cdiv(rows_needed, cap)
    if rows_needed >= 2 * align:
        n_tiles = max(n_tiles, 2)                      # let both v7x TCs stream
    tile_rows = _round_up(pl.cdiv(rows_needed, n_tiles), align)
    rows = n_tiles * tile_rows

    channels = [_pack_channel(v, rows, dt) for v, dt in zip(chan_vals, chan_dtypes)]

    vmem_limit = int(min(max(2 * tile_rows * per_row_bytes + (4 << 20), 32 << 20),
                         vmem_cap * 3 // 4))

    out = _pallas_forward(kernel, _pack_params(params), channels,
                          rows, tile_rows, vmem_limit)
    return out.reshape(-1)[:n].reshape(n, 1)


def nonleaf_encoder(radius, left_input, right_input, params):
    """Single-node forward matching NonLeafEncoder.forward.

    radius, right_input: (1,1) f32; left_input: (1,1) f32 or None. Returns (1,1) f32.
    """
    # TODO(synk): torch.tensor(input.radius) host-side attribute extraction has no
    # Pallas equivalent; the caller passes radius as an array.
    if left_input is None:
        return nonleaf_encoder_batched(params, radius, right_input)
    return nonleaf_encoder_batched(params, radius, right_input, left=left_input)


# ---------------------------------------------------------------------------
# Params + pure-JAX references
# ---------------------------------------------------------------------------
def init_params(key):
    ks = jax.random.split(key, 8)
    f32 = jnp.float32
    return {
        # radius_feature = nn.Linear(1, 1)
        "w_rad":   jax.random.normal(ks[0], (1, 1), f32) * 0.5,
        "b_rad":   jax.random.normal(ks[1], (1, 1), f32) * 0.1,
        # left = nn.Linear(1, 1)
        "w_left":  jax.random.normal(ks[2], (1, 1), f32) * 0.5,
        "b_left":  jax.random.normal(ks[3], (1, 1), f32) * 0.1,
        # right = nn.Linear(1, 1)
        "w_right": jax.random.normal(ks[4], (1, 1), f32) * 0.5,
        "b_right": jax.random.normal(ks[5], (1, 1), f32) * 0.1,
        # encoder = nn.Linear(2, 1)  -> weight (1, 2), bias (1,)
        "w_enc":   jax.random.normal(ks[6], (1, 2), f32) * 0.5,
        "b_enc":   jax.random.normal(ks[7], (1, 1), f32) * 0.1,
    }


def nonleaf_encoder_ref(radius, left_input, right_input, params):
    rad_h = jnp.tanh(radius * params["w_rad"] + params["b_rad"])
    ctx = right_input * params["w_right"] + params["b_right"]
    if left_input is not None:
        ctx = ctx + left_input * params["w_left"] + params["b_left"]
    ctx = jnp.tanh(ctx)
    feat = jnp.concatenate([rad_h, ctx], axis=1)           # (1, 2)
    out = jnp.dot(feat, params["w_enc"].T) + params["b_enc"]
    return jnp.tanh(out)


def nonleaf_encoder_batched_ref(params, radius, right, left=None, has_left=None):
    rad_h = jnp.tanh(radius * params["w_rad"][0, 0] + params["b_rad"][0, 0])
    ctx = right * params["w_right"][0, 0] + params["b_right"][0, 0]
    if left is not None:
        lterm = left * params["w_left"][0, 0] + params["b_left"][0, 0]
        if has_left is not None:
            lterm = jnp.where(has_left > 0, lterm, 0.0)
        ctx = ctx + lterm
    ctx = jnp.tanh(ctx)
    return jnp.tanh(rad_h * params["w_enc"][0, 0]
                    + ctx * params["w_enc"][0, 1]
                    + params["b_enc"][0, 0])


# ---------------------------------------------------------------------------
if __name__ == "__main__":
    key = jax.random.PRNGKey(0)
    pkey, dkey = jax.random.split(key)
    params = init_params(pkey)
    TOL = dict(atol=1e-4, rtol=1e-4)

    # --- single-node cases, matching the original module's forward ----------
    r1, l1, ri1 = jax.random.split(dkey, 3)
    radius = jax.random.normal(r1, (1, 1), jnp.float32)
    left_input = jax.random.normal(l1, (1, 1), jnp.float32)
    right_input = jax.random.normal(ri1, (1, 1), jnp.float32)

    out = jax.block_until_ready(nonleaf_encoder(radius, left_input, right_input, params))
    ref = nonleaf_encoder_ref(radius, left_input, right_input, params)
    assert out.shape == (1, 1)
    assert jnp.allclose(out, ref, **TOL)

    out_nl = jax.block_until_ready(nonleaf_encoder(radius, None, right_input, params))
    ref_nl = nonleaf_encoder_ref(radius, None, right_input, params)
    assert jnp.allclose(out_nl, ref_nl, **TOL)

    # --- small batch, masked path, gridless; NaNs in mask-off left slots ----
    n = 10
    k1, k2, k3, k4 = jax.random.split(dkey, 4)
    radius_b = jax.random.normal(k1, (n,), jnp.float32)
    left_b = jax.random.normal(k2, (n,), jnp.float32)
    right_b = jax.random.normal(k3, (n,), jnp.float32)
    has_left_b = (jax.random.uniform(k4, (n,)) > 0.5).astype(jnp.float32)
    left_b = jnp.where(has_left_b > 0, left_b, jnp.nan)   # garbage where mask is off

    out_b = jax.block_until_ready(nonleaf_encoder_batched(
        params, radius_b, right_b, left=left_b, has_left=has_left_b))
    ref_b = nonleaf_encoder_batched_ref(
        params, radius_b, right_b, left_b, has_left_b).reshape(n, 1)
    assert out_b.shape == (n, 1)
    assert jnp.all(jnp.isfinite(out_b))
    assert jnp.allclose(out_b, ref_b, **TOL)

    # --- medium batch, all-left specialization, forced 2-tile grid path -----
    n2 = 3000
    k5, k6, k7 = jax.random.split(k4, 3)
    radius_c = jax.random.normal(k5, (n2,), jnp.float32)
    left_c = jax.random.normal(k6, (n2,), jnp.float32)
    right_c = jax.random.normal(k7, (n2,), jnp.float32)

    out_c = jax.block_until_ready(nonleaf_encoder_batched(
        params, radius_c, right_c, left=left_c))          # has_left=None -> 3-channel kernel
    ref_c = nonleaf_encoder_batched_ref(params, radius_c, right_c, left_c).reshape(n2, 1)
    assert jnp.allclose(out_c, ref_c, **TOL)

    # --- larger batch, masked + int8 mask, small tile cap -> multi-tile grid -
    n3 = 5000
    k8, k9, k10, k11 = jax.random.split(k7, 4)
    radius_d = jax.random.normal(k8, (n3,), jnp.float32)
    left_d = jax.random.normal(k9, (n3,), jnp.float32)
    right_d = jax.random.normal(k10, (n3,), jnp.float32)
    has_left_d = (jax.random.uniform(k11, (n3,)) > 0.5).astype(jnp.float32)

    out_d = jax.block_until_ready(nonleaf_encoder_batched(
        params, radius_d, right_d, left=left_d, has_left=has_left_d,
        max_tile_rows=32))   # small cap just to exercise the multi-tile grid path
    ref_d = nonleaf_encoder_batched_ref(
        params, radius_d, right_d, left_d, has_left_d).reshape(n3, 1)
    assert jnp.allclose(out_d, ref_d, **TOL)

    # --- bf16 input channels (f32 math in-kernel); ref uses bf16-rounded inputs
    n4 = 300
    k12, k13, k14 = jax.random.split(k11, 3)
    radius_e = jax.random.normal(k12, (n4,), jnp.float32)
    left_e = jax.random.normal(k13, (n4,), jnp.float32)
    right_e = jax.random.normal(k14, (n4,), jnp.float32)

    out_e = jax.block_until_ready(nonleaf_encoder_batched(
        params, radius_e, right_e, left=left_e, channel_dtype=jnp.bfloat16))
    rnd = lambda x: x.astype(jnp.bfloat16).astype(jnp.float32)
    ref_e = nonleaf_encoder_batched_ref(
        params, rnd(radius_e), rnd(right_e), rnd(left_e)).reshape(n4, 1)
    assert jnp.allclose(out_e, ref_e, **TOL)

    print("KERNEL_OK")
</pallas_src>

<mosaic_0001>
module attributes {stable_mosaic.version = 11 : i64} {
  func.func @_kernel_all_left(%arg0: memref<9xf32, #tpu.memory_space<smem>>, %arg1: memref<8x128xf32, #tpu.memory_space<vmem>>, %arg2: memref<8x128xf32, #tpu.memory_space<vmem>>, %arg3: memref<8x128xf32, #tpu.memory_space<vmem>>, %arg4: memref<8x128xf32, #tpu.memory_space<vmem>>) attributes {dimension_semantics = [], scalar_prefetch = 0 : i64, scratch_operands = 0 : i64, tpu.core_type = #tpu.core_type<tc>} {
    %c0 = arith.constant 0 : index
    %0 = memref.load %arg0[%c0] : memref<9xf32, #tpu.memory_space<smem>>
    %c1 = arith.constant 1 : index
    %1 = memref.load %arg0[%c1] : memref<9xf32, #tpu.memory_space<smem>>
    %c2 = arith.constant 2 : index
    %2 = memref.load %arg0[%c2] : memref<9xf32, #tpu.memory_space<smem>>
    %c3 = arith.constant 3 : index
    %3 = memref.load %arg0[%c3] : memref<9xf32, #tpu.memory_space<smem>>
    %c4 = arith.constant 4 : index
    %4 = memref.load %arg0[%c4] : memref<9xf32, #tpu.memory_space<smem>>
    %c5 = arith.constant 5 : index
    %5 = memref.load %arg0[%c5] : memref<9xf32, #tpu.memory_space<smem>>
    %c6 = arith.constant 6 : index
    %6 = memref.load %arg0[%c6] : memref<9xf32, #tpu.memory_space<smem>>
    %c7 = arith.constant 7 : index
    %7 = memref.load %arg0[%c7] : memref<9xf32, #tpu.memory_space<smem>>
    %c8 = arith.constant 8 : index
    %8 = memref.load %arg0[%c8] : memref<9xf32, #tpu.memory_space<smem>>
    %c0_0 = arith.constant 0 : index
    %c0_1 = arith.constant 0 : index
    %9 = vector.load %arg1[%c0_0, %c0_1] : memref<8x128xf32, #tpu.memory_space<vmem>>, vector<8x128xf32>
    %c0_2 = arith.constant 0 : index
    %c0_3 = arith.constant 0 : index
    %10 = vector.load %arg2[%c0_2, %c0_3] : memref<8x128xf32, #tpu.memory_space<vmem>>, vector<8x128xf32>
    %c0_4 = arith.constant 0 : index
    %c0_5 = arith.constant 0 : index
    %11 = vector.load %arg3[%c0_4, %c0_5] : memref<8x128xf32, #tpu.memory_space<vmem>>, vector<8x128xf32>
    %12 = vector.broadcast %0 : f32 to vector<8x128xf32>
    %13 = arith.mulf %9, %12 : vector<8x128xf32>
    %14 = vector.broadcast %1 : f32 to vector<8x128xf32>
    %15 = arith.addf %13, %14 : vector<8x128xf32>
    %16 = math.tanh %15 : vector<8x128xf32>
    %17 = vector.broadcast %4 : f32 to vector<8x128xf32>
    %18 = arith.mulf %11, %17 : vector<8x128xf32>
    %19 = vector.broadcast %5 : f32 to vector<8x128xf32>
    %20 = arith.addf %18, %19 : vector<8x128xf32>
    %21 = vector.broadcast %2 : f32 to vector<8x128xf32>
    %22 = arith.mulf %10, %21 : vector<8x128xf32>
    %23 = arith.addf %20, %22 : vector<8x128xf32>
    %24 = vector.broadcast %3 : f32 to vector<8x128xf32>
    %25 = arith.addf %23, %24 : vector<8x128xf32>
    %26 = math.tanh %25 : vector<8x128xf32>
    %27 = vector.broadcast %6 : f32 to vector<8x128xf32>
    %28 = arith.mulf %16, %27 : vector<8x128xf32>
    %29 = vector.broadcast %7 : f32 to vector<8x128xf32>
    %30 = arith.mulf %26, %29 : vector<8x128xf32>
    %31 = arith.addf %28, %30 : vector<8x128xf32>
    %32 = vector.broadcast %8 : f32 to vector<8x128xf32>
    %33 = arith.addf %31, %32 : vector<8x128xf32>
    %34 = math.tanh %33 : vector<8x128xf32>
    %c0_6 = arith.constant 0 : index
    %c0_7 = arith.constant 0 : index
    %35 = vector.load %arg4[%c0_6, %c0_7] : memref<8x128xf32, #tpu.memory_space<vmem>>, vector<8x128xf32>
    tpu.vector_store %arg4[%c0_6, %c0_7], %34 {strides = array<i32>} : memref<8x128xf32, #tpu.memory_space<vmem>>, vector<8x128xf32>,
    return
  }
}

</mosaic_0001>

<bundles_post_ra>
// kernel: tpu_custom_call.1
= control target key start
LH: loop header
LB: loop body
LE: loop exit
PB: predicated region body
PF: predicated region fallthrough
CT: control target
= control target key end

     0   :  { %9 = vsyncpa [#allocation5], 0  ;;  %s307_s0 = inlined_call_operand.hbm [shape: f32[9], index: 0, kind: input, shape index: {}]   ;;  %s308_s1 = inlined_call_operand.hbm [shape: f32[8,128], index: 1, kind: input, shape index: {}]   ;;  %s309_s2 = inlined_call_operand.hbm [shape: f32[8,128], index: 2, kind: input, shape index: {}]   ;;  %s310_s3 = inlined_call_operand.hbm [shape: f32[8,128], index: 3, kind: input, shape index: {}]   ;;  %s311_s4 = inlined_call_operand.hbm [shape: f32[8,128], index: 4, kind: output, shape index: {}]  }
   0x1   :  { %10 = vsyncpa [#allocation3], 0 }
   0x2   :  { %11 = vsyncpa [#allocation8], 0  ;;  %s38_s17 = sshll.u32 %s309_s2, 4  ;;  %s39_s17 = int_to_ptr.hbm [resolvable:$true] %s38_s17 }
   0x3   :  { %12 = vsyncpa [#allocation4], 0  ;;  %s262_s18 = smov [#allocation7]   ;;  %s18_s22 = sshll.u32 %s307_s0, 4  ;;  %s19_s22 = int_to_ptr.hbm [resolvable:$true] %s18_s22 }
   0x4   :  { %s40_s19 = sshll.u32 %s262_s18, 4  ;;  %s263_s23 = smov [#allocation2]   ;;  %s41_s19 = int_to_ptr.vmem [resolvable:$true] %s40_s19 }
   0x5   :  { %43 = dma.hbm_to_vmem [thread:$0]  %s39_s17, 128, %s41_s19, [#allocation8]  }
   0x6   :  { %21 = dma.hbm_to_smem %s19_s22, 16, %s263_s23, [#allocation5]  }
   0x7   :  { %s27_s26 = sshll.u32 %s308_s1, 4  ;;  %s264_s27 = smov [#allocation6]   ;;  %s28_s26 = int_to_ptr.hbm [resolvable:$true] %s27_s26 }
   0x8   :  { %s29_s2 = sshll.u32 %s264_s27, 4  ;;  %s49_s30 = sshll.u32 %s310_s3, 4  ;;  %s30_s2 = int_to_ptr.vmem [resolvable:$true] %s29_s2  ;;  %s50_s30 = int_to_ptr.hbm [resolvable:$true] %s49_s30 }
   0x9   :  { %32 = dma.hbm_to_vmem [thread:$0]  %s28_s26, 128, %s30_s2, [#allocation3]  }
   0xa   :  { %s265_s5 = smov [#allocation9]  }
   0xb   :  { %s51_s0 = sshll.u32 %s265_s5, 4  ;;  %s52_s0 = int_to_ptr.vmem [resolvable:$true] %s51_s0 }
   0xc   :  { %54 = dma.hbm_to_vmem [thread:$0]  %s50_s30, 128, %s52_s0, [#allocation8]  }
   0xd   :  { %254 = dma.done.wait [#allocation5], 16  }
   0xe   :  { %255 = vsyncadd [#allocation5], 4294967280 }
   0xf   :  { %256 = dma.done.wait [#allocation3], 128  }
  0x10   :  { %257 = vsyncadd [#allocation3], 4294967168 }
  0x11   :  { %258 = dma.done.wait [#allocation8], 256  }
  0x12   :  { %259 = vsyncadd [#allocation8], 4294967040 }
  0x13   :  { %71 = sfence }
  0x14   :  { %s72_s1 = sld [smem:[#allocation2]]  ;;  %v81_v0 = vld [vmem:[#allocation6] sm:$0xff]  ;;  %v82_v3 = vld [vmem:[#allocation7] sm:$0xff]  ;;  %v83_v4 = vld [vmem:[#allocation9] sm:$0xff]  ;;  %s266_s13 = smov [#allocation10]  }
  0x15   :  { %s127_s6 = sld [smem:[#allocation2 + $0x1]]  ;;  %s113_s14 = sshll.u32 %s266_s13, 4  ;;  %s114_s14 = int_to_ptr.vmem [resolvable:$true] %s113_s14 }
  0x16   :  { %s128_s7 = sld [smem:[#allocation2 + $0x2]]  ;;  %s115_s17 = sshll.u32 %s311_s4, 4  ;;  %s116_s17 = int_to_ptr.hbm [resolvable:$true] %s115_s17 }
  0x17   :  { %s130_s8 = sld [smem:[#allocation2 + $0x4]] }
  0x18   :  { %s131_s9 = sld [smem:[#allocation2 + $0x5]] }
  0x19   :  { %s129_s3 = sld [smem:[#allocation2 + $0x3]] }
  0x1a   :  { %v84_v1 = vstv %s72_s1  ;;  %s132_s10 = sld [smem:[#allocation2 + $0x6]] }
  0x1b   :  { %v85_v2 = vmul.f32 %v84_v1, %v81_v0  ;;  %v86_v5 = vstv %s127_s6  ;;  %s133_s11 = sld [smem:[#allocation2 + $0x7]] }
  0x1c   :  { %v93_v6 = vstv %s128_s7  ;;  %s134_s12 = sld [smem:[#allocation2 + $0x8]] }
  0x1d   :  { %v89_v7 = vstv %s130_s8  ;;  %v87_v8 = vadd.f32 %v86_v5, %v85_v2  ;;  %v94_v11 = vmul.f32 %v93_v6, %v82_v3 }
  0x1e   :  { %v90_v9 = vmul.f32 %v89_v7, %v83_v4  ;;  %v91_v10 = vstv %s131_s9 }
  0x1f   :  { %v96_v13 = vstv %s129_s3  ;;  %140 = vtanh.f32 %v87_v8 }
  0x20   :  { %v92_v12 = vadd.f32 %v91_v10, %v90_v9  ;;  %v99_v17 = vstv %s132_s10 }
  0x21   :  { %v101_v18 = vstv %s133_s11 }
  0x22   :  { %v95_v14 = vadd.f32 %v94_v11, %v92_v12  ;;  %v104_v22 = vstv %s134_s12 }
  0x24   :  { %v97_v15 = vadd.f32 %v96_v13, %v95_v14 }
  0x25   :  { %v141_v16 = vpop.eup %140 }
  0x26   :  { %142 = vtanh.f32 %v97_v15  ;;  %v100_v19 = vmul.f32 %v141_v16, %v99_v17 }
  0x2c   :  { %v143_v20 = vpop.eup %142 }
  0x2d   :  { %v102_v21 = vmul.f32 %v143_v20, %v101_v18 }
  0x2f   :  { %v103_v23 = vadd.f32 %v102_v21, %v100_v19 }
  0x31   :  { %v105_v24 = vadd.f32 %v104_v22, %v103_v23 }
  0x33   :  { %144 = vtanh.f32 %v105_v24 }
  0x39   :  { %v145_v25 = vpop.eup %144 }
  0x3a   :  { %107 = vst [vmem:[#allocation10] sm:$0xff] %v145_v25 }
  0x3b   :  { %118 = dma.vmem_to_hbm [thread:$0]  %s114_s14, 128, %s116_s17, [#allocation4]  }
  0x3c   :  { %260 = dma.done.wait [#allocation4], 128  }
  0x3d   :  { %261 = vsyncadd [#allocation4], 4294967168 }
  0x3e   :  { %123 = vsyncpa [#allocation3], 1 }
  0x3f   :  { %124 = vsyncpa [#allocation8], 1 }
  0x40   :  { %125 = vsyncpa [#allocation4], 1 }
  0x41   :  { %126 = vsyncpa [#allocation5], 1 }

</bundles_post_ra>
